<compile_context>
chip_gen: v7x
topology: tpu7x:2x2x1
jax: 0.10.0
libtpu: 0.0.40
codegen_flags: <defaults>
</compile_context>

<pallas_src>
import functools

import jax
import jax.numpy as jnp
from jax.experimental import pallas as pl
from jax.experimental.pallas import tpu as pltpu

_LANE = 128      # TPU vreg lane width (last dim)
_SUBLANE = 8     # base sublane width (f32)


def _round_up(n, m):
    return ((n + m - 1) // m) * m


def _sublane(dtype):
    """Native sublane multiple for a dtype (8 f32, 16 bf16, 32 int8/fp8)."""
    return max(_SUBLANE, 32 // jnp.dtype(dtype).itemsize)


@functools.lru_cache(maxsize=None)
def _vmem_capacity_bytes():
    try:
        cap = int(pltpu.get_tpu_info().vmem_capacity_bytes)
        if cap > 0:
            return cap
    except Exception:
        pass
    return 64 << 20          # conservative fallback (v7x per-core VMEM)


def _usable_vmem():
    cap = _vmem_capacity_bytes()
    return min(int(cap * 0.9), cap - (4 << 20))   # ~57 MiB v7x, ~115 MiB v5e/v6e


def _feature_plan(H, w_itemsize):
    """Pick (tn, Hn, tk, Hk): output-feature tile / padded width, K tile / padded width."""
    vmem = _usable_vmem()
    Hmin = _round_up(max(H, _LANE), _LANE)

    # Output-feature tile: lane-dense multiple of 128, <= 512; keep nj >= 2 when
    # possible so both v7x TensorCores get work even with a single batch tile.
    tn = min(512, Hmin)
    if Hmin >= 2 * _LANE:
        tn = min(tn, (Hmin // 2) // _LANE * _LANE)
    Hn = _round_up(Hmin, tn)

    # Contraction tile: sized so the double-buffered [tk, 2*tn] weight slab fits
    # ~1/4 of usable VMEM; prefer a tk that divides Hmin (no contraction padding).
    w_budget = max(vmem // 4, 4 << 20)
    tk_max = max(_LANE, min(Hmin, (w_budget // (2 * 2 * tn * w_itemsize)) // _LANE * _LANE))
    tk = tk_max
    cand = tk_max
    while cand >= max(_LANE, tk_max // 2):
        if Hmin % cand == 0:
            tk = cand
            break
        cand -= _LANE
    Hk = _round_up(Hmin, tk)
    return tn, Hn, tk, Hk


def highway_kernel(x_ref, w_ref, b_ref, o_ref, acc_ref):
    """One (batch tile i, output-feature tile j, K-chunk k) grid step.

    acc[i,j] += x[:, k-chunk] @ [Wp | Wt][k-chunk, tile j]    (MXU, f32 accumulate)
    at the last k:  z = acc + b;  out = x + sigmoid(z_t) * (relu(z_p) - x)
    """
    j = pl.program_id(1)
    k = pl.program_id(2)
    tn = o_ref.shape[1]
    tk = w_ref.shape[0]

    @pl.when(k == 0)
    def _():
        acc_ref[...] = jnp.zeros_like(acc_ref)

    # x is resident at full (padded) width; slice the lane-aligned K chunk.
    x_chunk = x_ref[:, pl.ds(pl.multiple_of(k * tk, _LANE), tk)]
    acc_ref[...] += jnp.dot(x_chunk, w_ref[...], preferred_element_type=jnp.float32)

    @pl.when(k == pl.num_programs(2) - 1)
    def _():
        z = acc_ref[...] + b_ref[...]                  # bias kept in f32
        proj = jnp.maximum(z[:, :tn], 0.0)             # relu(proj branch)
        gate = jax.nn.sigmoid(z[:, tn:])               # sigmoid(transform branch)
        x_blk = x_ref[:, pl.ds(pl.multiple_of(j * tn, _LANE), tn)].astype(jnp.float32)
        # g*p + (1-g)*x  ==  x + g*(p - x)   (saves one vmul + one temporary)
        o_ref[...] = (x_blk + gate * (proj - x_blk)).astype(o_ref.dtype)


def pack_highway_params(w_proj, b_proj, w_trans, b_trans):
    """Pre-pack Highway weights ONCE (hoisted out of the per-forward path).

    Weights must be pre-transposed to [in, out] so the kernel computes x @ W.
    Returns:
      w_cat: (nj, Hk, 2*tn) — per output tile j: [Wp[:, tile_j] | Wt[:, tile_j]]
      b_cat: (nj, 1, 2*tn) f32 — matching fused bias
    """
    H = int(w_proj.shape[0])
    w_isz = jnp.dtype(w_proj.dtype).itemsize
    tn, Hn, tk, Hk = _feature_plan(H, w_isz)
    nj = Hn // tn

    wp = jnp.pad(w_proj, ((0, Hk - H), (0, Hn - H)))
    wt = jnp.pad(w_trans, ((0, Hk - H), (0, Hn - H)))
    w_cat = jnp.concatenate(
        [wp.reshape(Hk, nj, tn), wt.reshape(Hk, nj, tn)], axis=-1
    ).transpose(1, 0, 2)                                   # (nj, Hk, 2*tn)

    bp = jnp.pad(b_proj, (0, Hn - H)).astype(jnp.float32)
    bt = jnp.pad(b_trans, (0, Hn - H)).astype(jnp.float32)
    b_cat = jnp.concatenate(
        [bp.reshape(nj, tn), bt.reshape(nj, tn)], axis=-1
    ).reshape(nj, 1, 2 * tn)
    return w_cat, b_cat


@jax.jit
def highway_packed(x, w_cat, b_cat):
    """Hot path: x [B, H]; (w_cat, b_cat) from pack_highway_params."""
    B, H = x.shape
    out_dtype = x.dtype
    x_isz = jnp.dtype(x.dtype).itemsize
    w_isz = jnp.dtype(w_cat.dtype).itemsize
    out_isz = jnp.dtype(out_dtype).itemsize

    tn, Hn, tk, Hk = _feature_plan(H, w_isz)
    nj = Hn // tn
    nk = Hk // tk
    assert w_cat.shape == (nj, Hk, 2 * tn) and b_cat.shape == (nj, 1, 2 * tn), (
        "packed params do not match this input's feature size / tiling plan")
    Hx = max(Hn, Hk)                       # x padded wide enough for K chunks + gating slices

    vmem = _usable_vmem()
    sub = _sublane(x.dtype)

    # Batch tile: large (towards 1024) so the dominant weight stream is re-fetched
    # only ceil(Bp/tm) times, capped by the x tile's VMEM budget; batch padded UP
    # to a multiple of tm (never collapse to tiny tiles on awkward sizes).
    Bp0 = _round_up(max(B, sub), sub)
    x_budget = max(vmem * 3 // 8, 4 << 20)
    tm = min(1024, x_budget // (2 * Hx * x_isz))
    tm = max(sub, tm // sub * sub)
    tm = min(tm, Bp0)
    Bp = _round_up(Bp0, tm)

    def vmem_est(tm_):
        return (2 * tm_ * Hx * x_isz              # x tile (double-buffered)
                + 2 * tk * 2 * tn * w_isz * 2     # fused weight slab (double-buffered)
                + 2 * 1 * 2 * tn * 4 * 2          # fused bias
                + 2 * tm_ * tn * out_isz          # output tile (double-buffered)
                + tm_ * 2 * tn * 4                # f32 accumulator scratch
                + 3 * tm_ * tn * 4                # epilogue f32 intermediates
                + (4 << 20))                      # compiler-internal slack
    while vmem_est(tm) > vmem and tm > sub:
        tm = max(sub, (tm // 2) // sub * sub)
        Bp = _round_up(Bp0, tm)
    ni = Bp // tm
    vmem_limit = int(min(max(vmem_est(tm), 32 << 20), vmem))

    x_p = jnp.pad(x, ((0, Bp - B), (0, Hx - H)))

    cost = pl.CostEstimate(
        flops=2 * Bp * Hk * (2 * Hn) + 6 * Bp * Hn,
        transcendentals=Bp * Hn,
        bytes_accessed=(Bp * Hx * x_isz
                        + ni * w_cat.size * w_isz        # weights re-streamed per batch tile
                        + ni * b_cat.size * 4
                        + Bp * Hn * out_isz),
    )

    out_p = pl.pallas_call(
        highway_kernel,
        out_shape=jax.ShapeDtypeStruct((Bp, Hn), out_dtype),
        grid=(ni, nj, nk),
        in_specs=[
            pl.BlockSpec((tm, Hx), lambda i, j, k: (i, 0)),               # x: resident over j, k
            pl.BlockSpec((None, tk, 2 * tn), lambda i, j, k: (j, k, 0)),  # fused weights: streamed
            pl.BlockSpec((None, 1, 2 * tn), lambda i, j, k: (j, 0, 0)),   # fused bias
        ],
        out_specs=pl.BlockSpec((tm, tn), lambda i, j, k: (i, j)),
        scratch_shapes=[pltpu.VMEM((tm, 2 * tn), jnp.float32)],
        compiler_params=pltpu.CompilerParams(
            dimension_semantics=("parallel", "parallel", "arbitrary"),
            vmem_limit_bytes=vmem_limit),
        cost_estimate=cost,
    )(x_p, w_cat, b_cat)

    return out_p[:B, :H]


def highway(x, w_proj, b_proj, w_trans, b_trans):
    """One-shot convenience wrapper (repacks weights on every call).
    For repeated forward passes, call pack_highway_params once and use highway_packed."""
    w_cat, b_cat = pack_highway_params(w_proj, b_proj, w_trans, b_trans)
    return highway_packed(x, w_cat, b_cat)


def highway_ref(x, w_proj, b_proj, w_trans, b_trans):
    proj = jax.nn.relu(x @ w_proj + b_proj)
    gate = jax.nn.sigmoid(x @ w_trans + b_trans)
    return gate * proj + (1.0 - gate) * x


def _make_params(key, H, dtype=jnp.float32):
    k_wp, k_bp, k_wt = jax.random.split(key, 3)
    bound = 1.0 / float(jnp.sqrt(H))
    w_proj = jax.random.uniform(k_wp, (H, H), minval=-bound, maxval=bound, dtype=dtype)
    b_proj = jax.random.uniform(k_bp, (H,), minval=-bound, maxval=bound, dtype=dtype)
    w_trans = jax.random.uniform(k_wt, (H, H), minval=-bound, maxval=bound, dtype=dtype)
    b_trans = jnp.full((H,), -2.0, dtype=dtype)   # transform.bias.data.fill_(-2.0)
    return w_proj, b_proj, w_trans, b_trans


if __name__ == "__main__":
    key = jax.random.PRNGKey(0)
    k_x1, k_p1, k_x2, k_p2 = jax.random.split(key, 4)

    # Case 1: lane-dense shape (batch=16, input_size=128), f32 — packed (hot) path.
    B, H = 16, 128
    x = jax.random.normal(k_x1, (B, H), dtype=jnp.float32)
    w_proj, b_proj, w_trans, b_trans = _make_params(k_p1, H)
    w_cat, b_cat = pack_highway_params(w_proj, b_proj, w_trans, b_trans)   # packed once
    out = highway_packed(x, w_cat, b_cat)
    jax.block_until_ready(out)
    ref = highway_ref(x, w_proj, b_proj, w_trans, b_trans)
    assert jnp.allclose(out, ref, atol=1e-5, rtol=1e-5), "mismatch vs reference (H=128)"

    # Case 2: input_size=160 (not a multiple of 128) -> padding path, nj=2 feature tiles.
    B2, H2 = 24, 160
    x2 = jax.random.normal(k_x2, (B2, H2), dtype=jnp.float32)
    w_proj2, b_proj2, w_trans2, b_trans2 = _make_params(k_p2, H2)
    out2 = highway(x2, w_proj2, b_proj2, w_trans2, b_trans2)               # convenience path
    jax.block_until_ready(out2)
    ref2 = highway_ref(x2, w_proj2, b_proj2, w_trans2, b_trans2)
    assert jnp.allclose(out2, ref2, atol=1e-5, rtol=1e-5), "mismatch vs reference (H=160)"

    print("KERNEL_OK")
</pallas_src>

<mosaic_0001>
module attributes {stable_mosaic.version = 11 : i64} {
  func.func @highway_kernel(%arg0: i32, %arg1: i32, %arg2: i32, %arg3: memref<16x128xf32, #tpu.memory_space<vmem>>, %arg4: memref<1x128x256xf32, #tpu.memory_space<vmem>>, %arg5: memref<1x1x256xf32, #tpu.memory_space<vmem>>, %arg6: memref<16x128xf32, #tpu.memory_space<vmem>>, %arg7: memref<16x256xf32, #tpu.memory_space<vmem>>) attributes {dimension_semantics = [#tpu.dimension_semantics<parallel>, #tpu.dimension_semantics<parallel>, #tpu.dimension_semantics<arbitrary>], iteration_bounds = array<i64: 1, 1, 1>, scalar_prefetch = 0 : i64, scratch_operands = 1 : i64, tpu.core_type = #tpu.core_type<tc>, window_params = [{transform_indices = @transform_0, window_bounds = array<i64: 16, 128>}, {transform_indices = @transform_1, window_bounds = array<i64: 1, 128, 256>}, {transform_indices = @transform_2, window_bounds = array<i64: 1, 1, 256>}, {transform_indices = @transform_3, window_bounds = array<i64: 16, 128>}]} {
    %c0_i32 = arith.constant 0 : i32
    %0 = arith.cmpi eq, %arg2, %c0_i32 : i32
    %1 = arith.extui %0 : i1 to i32
    %c0_i32_0 = arith.constant 0 : i32
    %2 = arith.cmpi ne, %1, %c0_i32_0 : i32
    scf.if %2 {
      %cst_10 = arith.constant 0.000000e+00 : f32
      %16 = vector.broadcast %cst_10 : f32 to vector<16x256xf32>
      %c0_11 = arith.constant 0 : index
      %c0_12 = arith.constant 0 : index
      %17 = vector.load %arg7[%c0_11, %c0_12] : memref<16x256xf32, #tpu.memory_space<vmem>>, vector<16x256xf32>
      tpu.vector_store %arg7[%c0_11, %c0_12], %16 {strides = array<i32>} : memref<16x256xf32, #tpu.memory_space<vmem>>, vector<16x256xf32>,
    } else {
    }
    %c128_i32 = arith.constant 128 : i32
    %3 = arith.muli %arg2, %c128_i32 : i32
    %4 = tpu.assume_multiple %3, 128 : i32
    %c0 = arith.constant 0 : index
    %5 = arith.index_cast %4 : i32 to index
    %6 = vector.load %arg3[%c0, %5] : memref<16x128xf32, #tpu.memory_space<vmem>>, vector<16x128xf32>
    %c0_1 = arith.constant 0 : index
    %c0_2 = arith.constant 0 : index
    %7 = vector.load %arg7[%c0_1, %c0_2] : memref<16x256xf32, #tpu.memory_space<vmem>>, vector<16x256xf32>
    %c0_3 = arith.constant 0 : index
    %c0_4 = arith.constant 0 : index
    %c0_5 = arith.constant 0 : index
    %8 = vector.load %arg4[%c0_3, %c0_4, %c0_5] : memref<1x128x256xf32, #tpu.memory_space<vmem>>, vector<1x128x256xf32>
    %9 = vector.shape_cast %8 : vector<1x128x256xf32> to vector<128x256xf32>
    %cst = arith.constant dense<0.000000e+00> : vector<16x256xf32>
    %10 = tpu.matmul %6, %9, %cst {dimension_numbers = #tpu.dot_dimension_numbers<[1], [0], [0], [1], [0, 0, 1, 1], [], []>} : vector<16x128xf32>, vector<128x256xf32>, vector<16x256xf32> -> vector<16x256xf32>
    %11 = arith.addf %7, %10 : vector<16x256xf32>
    %c0_6 = arith.constant 0 : index
    %c0_7 = arith.constant 0 : index
    %12 = vector.load %arg7[%c0_6, %c0_7] : memref<16x256xf32, #tpu.memory_space<vmem>>, vector<16x256xf32>
    tpu.vector_store %arg7[%c0_6, %c0_7], %11 {strides = array<i32>} : memref<16x256xf32, #tpu.memory_space<vmem>>, vector<16x256xf32>,
    %c0_i32_8 = arith.constant 0 : i32
    %13 = arith.cmpi eq, %arg2, %c0_i32_8 : i32
    %14 = arith.extui %13 : i1 to i32
    %c0_i32_9 = arith.constant 0 : i32
    %15 = arith.cmpi ne, %14, %c0_i32_9 : i32
    scf.if %15 {
      %c0_10 = arith.constant 0 : index
      %c0_11 = arith.constant 0 : index
      %16 = vector.load %arg7[%c0_10, %c0_11] : memref<16x256xf32, #tpu.memory_space<vmem>>, vector<16x256xf32>
      %c0_12 = arith.constant 0 : index
      %c0_13 = arith.constant 0 : index
      %c0_14 = arith.constant 0 : index
      %17 = vector.load %arg5[%c0_12, %c0_13, %c0_14] : memref<1x1x256xf32, #tpu.memory_space<vmem>>, vector<1x1x256xf32>
      %18 = vector.shape_cast %17 : vector<1x1x256xf32> to vector<1x256xf32>
      %19 = vector.broadcast %18 : vector<1x256xf32> to vector<16x256xf32>
      %20 = arith.addf %16, %19 : vector<16x256xf32>
      %21 = vector.extract_strided_slice %20 {offsets = [0, 0], sizes = [16, 128], strides = [1, 1]} : vector<16x256xf32> to vector<16x128xf32>
      %cst_15 = arith.constant 0.000000e+00 : f32
      %22 = vector.broadcast %cst_15 : f32 to vector<16x128xf32>
      %23 = arith.maximumf %21, %22 : vector<16x128xf32>
      %24 = vector.extract_strided_slice %20 {offsets = [0, 128], sizes = [16, 128], strides = [1, 1]} : vector<16x256xf32> to vector<16x128xf32>
      %25 = arith.negf %24 : vector<16x128xf32>
      %26 = math.exp %25 : vector<16x128xf32>
      %cst_16 = arith.constant 1.000000e+00 : f32
      %27 = vector.broadcast %cst_16 : f32 to vector<16x128xf32>
      %28 = arith.addf %27, %26 : vector<16x128xf32>
      %29 = arith.divf %27, %28 : vector<16x128xf32>
      %c128_i32_17 = arith.constant 128 : i32
      %30 = arith.muli %arg1, %c128_i32_17 : i32
      %31 = tpu.assume_multiple %30, 128 : i32
      %c0_18 = arith.constant 0 : index
      %32 = arith.index_cast %31 : i32 to index
      %33 = vector.load %arg3[%c0_18, %32] : memref<16x128xf32, #tpu.memory_space<vmem>>, vector<16x128xf32>
      %34 = arith.subf %23, %33 : vector<16x128xf32>
      %35 = arith.mulf %29, %34 : vector<16x128xf32>
      %36 = arith.addf %33, %35 : vector<16x128xf32>
      %c0_19 = arith.constant 0 : index
      %c0_20 = arith.constant 0 : index
      %37 = vector.load %arg6[%c0_19, %c0_20] : memref<16x128xf32, #tpu.memory_space<vmem>>, vector<16x128xf32>
      tpu.vector_store %arg6[%c0_19, %c0_20], %36 {strides = array<i32>} : memref<16x128xf32, #tpu.memory_space<vmem>>, vector<16x128xf32>,
    } else {
    }
    return
  }
  func.func @transform_0(%arg0: i32, %arg1: i32, %arg2: i32) -> (i32, i32) {
    %c0_i32 = arith.constant 0 : i32
    %c0_i32_0 = arith.constant 0 : i32
    return %arg0, %c0_i32 : i32, i32
  }
  func.func @transform_1(%arg0: i32, %arg1: i32, %arg2: i32) -> (i32, i32, i32) {
    %c0_i32 = arith.constant 0 : i32
    %c0_i32_0 = arith.constant 0 : i32
    return %arg1, %arg2, %c0_i32 : i32, i32, i32
  }
  func.func @transform_2(%arg0: i32, %arg1: i32, %arg2: i32) -> (i32, i32, i32) {
    %c0_i32 = arith.constant 0 : i32
    %c0_i32_0 = arith.constant 0 : i32
    %c0_i32_1 = arith.constant 0 : i32
    return %arg1, %c0_i32, %c0_i32_0 : i32, i32, i32
  }
  func.func @transform_3(%arg0: i32, %arg1: i32, %arg2: i32) -> (i32, i32) {
    %c0_i32 = arith.constant 0 : i32
    return %arg0, %arg1 : i32, i32
  }
}

</mosaic_0001>

<bundles_post_ra>
// kernel: highway_packed.1
= control target key start
LH: loop header
LB: loop body
LE: loop exit
PB: predicated region body
PF: predicated region fallthrough
CT: control target
= control target key end

     0   :  { %8 = vsyncpa [#allocation4], 0  ;;  %s460_s0 = inlined_call_operand.hbm [shape: f32[16,128], index: 0, kind: input, shape index: {}]   ;;  %s461_s1 = inlined_call_operand.hbm [shape: f32[1,128,256], index: 1, kind: input, shape index: {}]   ;;  %s462_s2 = inlined_call_operand.vmem [shape: f32[1,1,256], index: 2, kind: input, shape index: {}]   ;;  %s463_s3 = inlined_call_operand.hbm [shape: f32[16,128], index: 3, kind: output, shape index: {}]  }
   0x1   :  { %9 = vsyncpa [#allocation7], 0 }
   0x2   :  { %10 = vsyncpa [#allocation5], 0  ;;  %s387_s12 = smov [#allocation3]   ;;  %s315_s16 = scalar_lea.hbm %s460_s0, 256 }
   0x3   :  { %s16_s13 = sshll.u32 %s387_s12, 4  ;;  %p316_p0 = scmp.ne.s32.totalorder %s460_s0, %s315_s16  ;;  %s17_s13 = int_to_ptr.vmem [resolvable:$true] %s16_s13 }
   0x4   :  { %p319_p1 = scmp.lt.u32.totalorder %s315_s16, %s460_s0 }
   0x6   :  { %p321_p2 = pnand %p319_p1, %p316_p0 }
   0x8   :  { %324 = shalt.err (!%p321_p2)
}
   0x9   :  { %s325_s21 = scalar_lea.vmem %s17_s13, 256  ;;  %p330_p4 = scmp.lt.s32.totalorder %s17_s13, %s17_s13 }
   0xa   :  { %p326_p3 = scmp.ne.s32.totalorder %s17_s13, %s325_s21  ;;  %p331_p5 = scmp.lt.s32.totalorder %s325_s21, %s325_s21 }
   0xc   :  { %p332_p6 = por %p331_p5, %p330_p4 }
   0xe   :  { %p333_p7 = pnand %p332_p6, %p326_p3 }
  0x10   :  { %336 = shalt.err (!%p333_p7)
}
  0x11   :  { %s388_s22 = smov 128   ;;  %s389_s23 = smov 8  }
  0x12   :  { %22 = dma.hbm_to_vmem [thread:$0]  %s460_s0, 256, %s17_s13, [#allocation4], %s388_s22, %s388_s22, %s389_s23  }
  0x13   :  { %s390_s26 = smov [#allocation6]   ;;  %s337_s30 = scalar_lea.hbm %s461_s1, 4096 }
  0x14   :  { %s28_s27 = sshll.u32 %s390_s26, 4  ;;  %p338_p8 = scmp.ne.s32.totalorder %s461_s1, %s337_s30  ;;  %s29_s27 = int_to_ptr.vmem [resolvable:$true] %s28_s27 }
  0x15   :  { %p341_p9 = scmp.lt.u32.totalorder %s337_s30, %s461_s1 }
  0x17   :  { %p343_p10 = pnand %p341_p9, %p338_p8 }
  0x19   :  { %346 = shalt.err (!%p343_p10)
}
  0x1a   :  { %s347_s8 = scalar_lea.vmem %s29_s27, 4096  ;;  %p352_p12 = scmp.lt.s32.totalorder %s29_s27, %s29_s27 }
  0x1b   :  { %p348_p11 = scmp.ne.s32.totalorder %s29_s27, %s347_s8  ;;  %p353_p13 = scmp.lt.s32.totalorder %s347_s8, %s347_s8 }
  0x1d   :  { %p354_p0 = por %p353_p13, %p352_p12 }
  0x1f   :  { %p355_p1 = pnand %p354_p0, %p348_p11 }
  0x21   :  { %358 = shalt.err (!%p355_p1)
}
  0x22   :  { %s391_s0 = smov 256   ;;  %s392_s9 = smov 16  }
  0x23   :  { %34 = dma.hbm_to_vmem [thread:$0]  %s461_s1, 4096, %s29_s27, [#allocation7], %s391_s0, %s391_s0, %s392_s9  }
  0x24   :  { %381 = dma.done.wait [#allocation4], 256  }
  0x25   :  { %382 = vsyncadd [#allocation4], 4294967040 }
  0x26   :  { %383 = dma.done.wait [#allocation7], 4096  }
  0x27   :  { %384 = vsyncadd [#allocation7], 4294963200  ;;  %v393_v0 = vmov 0.0   ;;  %v62_v1 = vld [vmem:[#allocation6 + $0x8] sm:$0xff]  ;;  %v64_v2 = vld [vmem:[#allocation6 + $0x18] sm:$0xff]  ;;  %v187_v51 = vlaneseq }
  0x28   :  { %157 = vmatprep.mubr.f32.mxu0 %v393_v0  ;;  %163 = vmatprep.mubr.f32.mxu1 %v393_v0  ;;  %v61_v3 = vld [vmem:[#allocation6] sm:$0xff]  ;;  %v251_v4 = vpack.c.bf16 %v64_v2, %v62_v1  ;;  %v63_v5 = vld [vmem:[#allocation6 + $0x10] sm:$0xff]  ;;  %v66_v6 = vld [vmem:[#allocation6 + $0x28] sm:$0xff] }
  0x29   :  { %v68_v7 = vld [vmem:[#allocation6 + $0x38] sm:$0xff]  ;;  %v253_v8 = vpack.c.bf16 %v63_v5, %v61_v3  ;;  %v65_v10 = vld [vmem:[#allocation6 + $0x20] sm:$0xff]  ;;  %v67_v11 = vld [vmem:[#allocation6 + $0x30] sm:$0xff]  ;;  %v188_v52 = vshrl.u32 %v187_v51, 7 }
  0x2a   :  { %v255_v9 = vpack.c.bf16 %v68_v7, %v66_v6  ;;  %v70_v12 = vld [vmem:[#allocation6 + $0x48] sm:$0xff]  ;;  %252 = vmatprep.subr.bf16.mxu0 %v251_v4  ;;  %283 = vmatprep.subr.bf16.mxu1 %v251_v4  ;;  %v72_v13 = vld [vmem:[#allocation6 + $0x58] sm:$0xff]  ;;  %v257_v14 = vpack.c.bf16 %v67_v11, %v65_v10  ;;  %v69_v16 = vld [vmem:[#allocation6 + $0x40] sm:$0xff] }
  0x2b   :  { %254 = vmatpush1.bf16.msra.mxu0 %v253_v8  ;;  %291 = vmatpush1.bf16.msra.mxu1 %v253_v8  ;;  %v259_v15 = vpack.c.bf16 %v72_v13, %v70_v12  ;;  %v71_v17 = vld [vmem:[#allocation6 + $0x50] sm:$0xff]  ;;  %v74_v18 = vld [vmem:[#allocation6 + $0x68] sm:$0xff]  ;;  %v76_v19 = vld [vmem:[#allocation6 + $0x78] sm:$0xff]  ;;  %v193_v53 = vsub.s32 1, %v188_v52  ;;  %v189_v0 = vsub.s32 0, %v188_v52 }
  0x2c   :  { %256 = vmatprep.subr.bf16.mxu0 %v255_v9  ;;  %284 = vmatprep.subr.bf16.mxu1 %v255_v9  ;;  %v261_v20 = vpack.c.bf16 %v71_v17, %v69_v16  ;;  %v263_v21 = vpack.c.bf16 %v76_v19, %v74_v18  ;;  %v73_v22 = vld [vmem:[#allocation6 + $0x60] sm:$0xff]  ;;  %v75_v23 = vld [vmem:[#allocation6 + $0x70] sm:$0xff]  ;;  %v78_v24 = vld [vmem:[#allocation6 + $0x88] sm:$0xff] }
  0x2d   :  { %v80_v25 = vld [vmem:[#allocation6 + $0x98] sm:$0xff]  ;;  %v265_v26 = vpack.c.bf16 %v75_v23, %v73_v22  ;;  %v77_v28 = vld [vmem:[#allocation6 + $0x80] sm:$0xff]  ;;  %v79_v29 = vld [vmem:[#allocation6 + $0x90] sm:$0xff] }
  0x2e   :  { %v267_v27 = vpack.c.bf16 %v80_v25, %v78_v24  ;;  %v82_v30 = vld [vmem:[#allocation6 + $0xa8] sm:$0xff]  ;;  %v84_v31 = vld [vmem:[#allocation6 + $0xb8] sm:$0xff]  ;;  %v269_v32 = vpack.c.bf16 %v79_v29, %v77_v28  ;;  %v81_v34 = vld [vmem:[#allocation6 + $0xa0] sm:$0xff] }
  0x2f   :  { %258 = vmatpush1.bf16.msra.mxu0 %v257_v14  ;;  %292 = vmatpush1.bf16.msra.mxu1 %v257_v14  ;;  %v271_v33 = vpack.c.bf16 %v84_v31, %v82_v30  ;;  %v83_v35 = vld [vmem:[#allocation6 + $0xb0] sm:$0xff]  ;;  %v86_v36 = vld [vmem:[#allocation6 + $0xc8] sm:$0xff]  ;;  %v88_v37 = vld [vmem:[#allocation6 + $0xd8] sm:$0xff] }
  0x30   :  { %260 = vmatprep.subr.bf16.mxu0 %v259_v15  ;;  %285 = vmatprep.subr.bf16.mxu1 %v259_v15  ;;  %v273_v38 = vpack.c.bf16 %v83_v35, %v81_v34  ;;  %v275_v39 = vpack.c.bf16 %v88_v37, %v86_v36  ;;  %v85_v40 = vld [vmem:[#allocation6 + $0xc0] sm:$0xff]  ;;  %v87_v41 = vld [vmem:[#allocation6 + $0xd0] sm:$0xff]  ;;  %v90_v42 = vld [vmem:[#allocation6 + $0xe8] sm:$0xff] }
  0x31   :  { %v92_v43 = vld [vmem:[#allocation6 + $0xf8] sm:$0xff]  ;;  %v277_v44 = vpack.c.bf16 %v87_v41, %v85_v40  ;;  %v89_v46 = vld [vmem:[#allocation6 + $0xe0] sm:$0xff]  ;;  %v91_v47 = vld [vmem:[#allocation6 + $0xf0] sm:$0xff] }
  0x32   :  { %v279_v45 = vpack.c.bf16 %v92_v43, %v90_v42  ;;  %v281_v48 = vpack.c.bf16 %v91_v47, %v89_v46  ;;  %v55_v49 = vld [vmem:[#allocation3] sm:$0xff]  ;;  %v56_v50 = vld [vmem:[#allocation3 + $0x8] sm:$0xff] }
  0x33   :  { %262 = vmatpush1.bf16.msra.mxu0 %v261_v20  ;;  %293 = vmatpush1.bf16.msra.mxu1 %v261_v20  ;;  %v185_v54 = vld [vmem:[%s462_s2] sm:$0x3]  ;;  %s394_s2 = smov [#allocation8]  }
  0x34   :  { %264 = vmatprep.subr.bf16.mxu0 %v263_v21  ;;  %286 = vmatprep.subr.bf16.mxu1 %v263_v21  ;;  %v194_v55 = vrot.slane %v185_v54, %v193_v53  ;;  %v190_v2 = vrot.slane %v185_v54, %v189_v0  ;;  %s234_s13 = sshll.u32 %s394_s2, 4  ;;  %s235_s13 = int_to_ptr.vmem [resolvable:$true] %s234_s13 }
  0x35   :  { %s359_s14 = scalar_lea.vmem %s235_s13, 256  ;;  %p364_p3 = scmp.lt.s32.totalorder %s235_s13, %s235_s13 }
  0x36   :  { %p360_p2 = scmp.ne.s32.totalorder %s235_s13, %s359_s14  ;;  %p365_p4 = scmp.lt.s32.totalorder %s359_s14, %s359_s14 }
  0x37   :  { %266 = vmatpush1.bf16.msra.mxu0 %v265_v26  ;;  %294 = vmatpush1.bf16.msra.mxu1 %v265_v26 }
  0x38   :  { %268 = vmatprep.subr.bf16.mxu0 %v267_v27  ;;  %287 = vmatprep.subr.bf16.mxu1 %v267_v27  ;;  %p366_p5 = por %p365_p4, %p364_p3 }
  0x3a   :  { %p367_p6 = pnand %p366_p5, %p360_p2 }
  0x3b   :  { %270 = vmatpush1.bf16.msra.mxu0 %v269_v32  ;;  %295 = vmatpush1.bf16.msra.mxu1 %v269_v32 }
  0x3c   :  { %272 = vmatprep.subr.bf16.mxu0 %v271_v33  ;;  %288 = vmatprep.subr.bf16.mxu1 %v271_v33 }
  0x3f   :  { %274 = vmatpush1.bf16.msra.mxu0 %v273_v38  ;;  %296 = vmatpush1.bf16.msra.mxu1 %v273_v38 }
  0x40   :  { %276 = vmatprep.subr.bf16.mxu0 %v275_v39  ;;  %289 = vmatprep.subr.bf16.mxu1 %v275_v39 }
  0x43   :  { %278 = vmatpush1.bf16.msra.mxu0 %v277_v44  ;;  %297 = vmatpush1.bf16.msra.mxu1 %v277_v44 }
  0x44   :  { %280 = vmatprep.subr.bf16.mxu0 %v279_v45  ;;  %290 = vmatprep.subr.bf16.mxu1 %v279_v45 }
  0x47   :  { %282 = vmatpush1.bf16.msra.mxu0 %v281_v48  ;;  %298 = vmatpush1.bf16.msra.mxu1 %v281_v48 }
  0x4a   :  { %158 = vmatmul.mubr.f32.vlgmr.msra.gmra.mrb[0].mxu0 %v55_v49  ;;  %164 = vmatmul.mubr.f32.vlgmr.msra.gmra.mrb[0].mxu1 %v56_v50 }
 0x11d   :  { %v159_v56 = vpop.f32.mrb[0].mxu0  ;;  %v165_v57 = vpop.f32.mrb[0].mxu1 }
 0x11e   :  { %v161_v58 = vpop.f32.mrb[1].mxu0  ;;  %v167_v59 = vpop.f32.mrb[1].mxu1  ;;  %v197_v6 = vadd.f32 %v190_v2, %v159_v56  ;;  %v199_v7 = vadd.f32 %v190_v2, %v165_v57 }
 0x11f   :  { %v198_v60 = vadd.f32 %v194_v55, %v161_v58  ;;  %v200_v61 = vadd.f32 %v194_v55, %v167_v59 }
 0x120   :  { %v201_v8 = vmax.f32 %v197_v6, 0.0  ;;  %v202_v9 = vmax.f32 %v199_v7, 0.0 }
 0x121   :  { %v249_v62 = vmul.f32 -1.442695, %v198_v60  ;;  %v250_v63 = vmul.f32 -1.442695, %v200_v61 }
 0x122   :  { %v221_v10 = vsub.f32 %v201_v8, %v55_v49  ;;  %v222_v12 = vsub.f32 %v202_v9, %v56_v50 }
 0x123   :  { %307 = vpow2.f32 %v249_v62 }
 0x124   :  { %309 = vpow2.f32 %v250_v63 }
 0x12d   :  { %v308_v1 = vpop.eup %307 }
 0x12e   :  { %v310_v3 = vpop.eup %309  ;;  %v209_v4 = vadd.f32 1.0, %v308_v1 }
 0x12f   :  { %v210_v5 = vadd.f32 1.0, %v310_v3 }
 0x130   :  { %311 = vrcp.f32 %v209_v4 }
 0x131   :  { %313 = vrcp.f32 %v210_v5 }
 0x13a   :  { %v312_v11 = vpop.eup %311 }
 0x13b   :  { %v314_v13 = vpop.eup %313  ;;  %v223_v14 = vmul.f32 %v312_v11, %v221_v10 }
 0x13c   :  { %v224_v15 = vmul.f32 %v314_v13, %v222_v12 }
 0x13d   :  { %v225_v16 = vadd.f32 %v223_v14, %v55_v49 }
 0x13e   :  { %v226_v17 = vadd.f32 %v224_v15, %v56_v50 }
 0x13f   :  { %227 = vst [vmem:[#allocation8] sm:$0xff] %v225_v16 }
 0x140   :  { %228 = vst [vmem:[#allocation8 + $0x8] sm:$0xff] %v226_v17 }
 0x141   :  { %370 = shalt.err (!%p367_p6)
}
 0x142   :  { %s371_s17 = scalar_lea.hbm %s463_s3, 256 }
 0x143   :  { %p372_p7 = scmp.ne.s32.totalorder %s463_s3, %s371_s17  ;;  %p375_p8 = scmp.lt.u32.totalorder %s371_s17, %s463_s3 }
 0x145   :  { %p377_p9 = pnand %p375_p8, %p372_p7 }
 0x147   :  { %380 = shalt.err (!%p377_p9)
}
 0x148   :  { %240 = dma.vmem_to_hbm [thread:$0]  %s235_s13, 256, %s463_s3, [#allocation5], %s388_s22, %s388_s22, %s389_s23  }
 0x149   :  { %385 = dma.done.wait [#allocation5], 256  }
 0x14a   :  { %386 = vsyncadd [#allocation5], 4294967040 }
 0x14b   :  { %244 = vsyncpa [#allocation4], 1 }
 0x14c   :  { %245 = vsyncpa [#allocation7], 1 }
 0x14d   :  { %246 = vsyncpa [#allocation5], 1 }

</bundles_post_ra>
